<compile_context>
chip_gen: v7x
topology: tpu7x:2x2x1
jax: 0.10.0
libtpu: 0.0.40
codegen_flags: <defaults>
</compile_context>

<pallas_src>
import functools

import jax
import jax.numpy as jnp
from jax.experimental import pallas as pl
from jax.experimental.pallas import tpu as pltpu


# ---------------------------------------------------------------------------
# helpers
# ---------------------------------------------------------------------------
def _pick_row_tile(m):
    """Row-tile for the (M, Cin) @ (Cin, Cout) matmuls (multiple of 8)."""
    for t in (256, 128, 512, 64, 32, 16, 8):
        if m % t == 0:
            return t
    return m  # fallback: whole array (block dim == full dim is always legal)


# ---------------------------------------------------------------------------
# Kernel 1: fused 1x1 conv (BN scale pre-folded into W) + bias + SiLU
# ---------------------------------------------------------------------------
def _conv1x1_silu_kernel(x_ref, w_ref, b_ref, o_ref):
    y = jnp.dot(x_ref[...], w_ref[...], preferred_element_type=jnp.float32)
    y = y + b_ref[...]
    o_ref[...] = (y * jax.nn.sigmoid(y)).astype(o_ref.dtype)


def conv1x1_bn_silu(x2d, w_folded, bias, tm):
    m, cin = x2d.shape
    cout = w_folded.shape[1]
    assert m % tm == 0
    return pl.pallas_call(
        _conv1x1_silu_kernel,
        out_shape=jax.ShapeDtypeStruct((m, cout), jnp.float32),
        grid=(m // tm,),
        in_specs=[
            pl.BlockSpec((tm, cin), lambda i: (i, 0)),
            pl.BlockSpec((cin, cout), lambda i: (0, 0)),
            pl.BlockSpec((1, cout), lambda i: (0, 0)),
        ],
        out_specs=pl.BlockSpec((tm, cout), lambda i: (i, 0)),
        compiler_params=pltpu.CompilerParams(dimension_semantics=("parallel",)),
    )(x2d, w_folded, bias.reshape(1, cout))


# ---------------------------------------------------------------------------
# Kernel 2: cascaded SPPF pools (k=5 applied 1x/2x/3x == k=5/9/13 for stride-1
# max), separable (H then W), boundaries via an in-kernel -inf padded scratch.
# ---------------------------------------------------------------------------
def _sppf_pool_kernel(y_ref, p5_ref, p9_ref, p13_ref, pad_ref, *, H, W, r):
    k = 2 * r + 1
    # -inf ring; interior gets overwritten each stage, ring stays -inf.
    pad_ref[...] = jnp.full(pad_ref.shape, -jnp.inf, dtype=pad_ref.dtype)
    cur = y_ref[...].astype(jnp.float32)
    for o_ref in (p5_ref, p9_ref, p13_ref):
        # place current map in the padded interior
        pad_ref[:, r:r + H, r:r + W, :] = cur
        xp = pad_ref[...]
        # 1D running max along H
        acc = xp[:, 0:H, :, :]
        for s in range(1, k):
            acc = jnp.maximum(acc, xp[:, s:s + H, :, :])
        # store back (its W-pad columns are still -inf), then 1D max along W
        pad_ref[:, r:r + H, :, :] = acc
        xp = pad_ref[...]
        out = xp[:, r:r + H, 0:W, :]
        for s in range(1, k):
            out = jnp.maximum(out, xp[:, r:r + H, s:s + W, :])
        o_ref[...] = out.astype(o_ref.dtype)
        cur = out


def sppf_pools(y_nhwc, r):
    n, h, w, c = y_nhwc.shape
    cblk = 128 if c % 128 == 0 else c          # channel tiling needs no halo
    ncb = c // cblk
    spec = pl.BlockSpec((1, h, w, cblk), lambda bn, bc: (bn, 0, 0, bc))
    out_sd = jax.ShapeDtypeStruct((n, h, w, c), jnp.float32)
    kernel = functools.partial(_sppf_pool_kernel, H=h, W=w, r=r)
    return pl.pallas_call(
        kernel,
        out_shape=(out_sd, out_sd, out_sd),
        grid=(n, ncb),
        in_specs=[spec],
        out_specs=(spec, spec, spec),
        scratch_shapes=[pltpu.VMEM((1, h + 2 * r, w + 2 * r, cblk), jnp.float32)],
        compiler_params=pltpu.CompilerParams(
            dimension_semantics=("parallel", "parallel")),
    )(y_nhwc)


# ---------------------------------------------------------------------------
# Kernel 3: fused concat + cv2: four partial matmuls accumulated in f32,
# then bias + SiLU (no HBM concat of the 4*c_ channel tensor).
# ---------------------------------------------------------------------------
def _cv2_fused_kernel(y_ref, p5_ref, p9_ref, p13_ref,
                      w0_ref, w1_ref, w2_ref, w3_ref, b_ref, o_ref):
    acc = jnp.dot(y_ref[...], w0_ref[...], preferred_element_type=jnp.float32)
    acc = acc + jnp.dot(p5_ref[...], w1_ref[...], preferred_element_type=jnp.float32)
    acc = acc + jnp.dot(p9_ref[...], w2_ref[...], preferred_element_type=jnp.float32)
    acc = acc + jnp.dot(p13_ref[...], w3_ref[...], preferred_element_type=jnp.float32)
    acc = acc + b_ref[...]
    o_ref[...] = (acc * jax.nn.sigmoid(acc)).astype(o_ref.dtype)


def cv2_fused(y2d, p5_2d, p9_2d, p13_2d, w_chunks, bias, tm):
    m, c_ = y2d.shape
    cout = w_chunks[0].shape[1]
    assert m % tm == 0
    row_spec = pl.BlockSpec((tm, c_), lambda i: (i, 0))
    w_spec = pl.BlockSpec((c_, cout), lambda i: (0, 0))
    return pl.pallas_call(
        _cv2_fused_kernel,
        out_shape=jax.ShapeDtypeStruct((m, cout), jnp.float32),
        grid=(m // tm,),
        in_specs=[row_spec, row_spec, row_spec, row_spec,
                  w_spec, w_spec, w_spec, w_spec,
                  pl.BlockSpec((1, cout), lambda i: (0, 0))],
        out_specs=pl.BlockSpec((tm, cout), lambda i: (i, 0)),
        compiler_params=pltpu.CompilerParams(dimension_semantics=("parallel",)),
    )(y2d, p5_2d, p9_2d, p13_2d, *w_chunks, bias.reshape(1, cout))


# ---------------------------------------------------------------------------
# SPP module wrapper
# ---------------------------------------------------------------------------
def fold_bn(gamma, beta, mean, var, eps=1e-3):
    scale = gamma / jnp.sqrt(var + eps)
    bias = beta - mean * scale
    return scale, bias


def init_spp_params(key, c1, c2, ks=(5, 9, 13)):
    # SPPF cascade identity requires ks = (k0, 2k0-1, 3k0-2), e.g. (5, 9, 13).
    assert len(ks) == 3 and ks[1] == 2 * ks[0] - 1 and ks[2] == 3 * ks[0] - 2
    c_ = c1 // 2
    cin2 = c_ * (len(ks) + 1)
    k1, k2, k3, k4, k5, k6, k7, k8 = jax.random.split(key, 8)
    # cv1: conv weight stored as (Cin, Cout) for the channels-last matmul.
    w1 = 0.1 * jax.random.normal(k1, (c1, c_), jnp.float32)
    g1 = 1.0 + 0.1 * jax.random.normal(k2, (c_,), jnp.float32)
    b1 = 0.1 * jax.random.normal(k3, (c_,), jnp.float32)
    m1 = 0.1 * jax.random.normal(k4, (c_,), jnp.float32)
    v1 = jnp.abs(1.0 + 0.1 * jax.random.normal(k5, (c_,), jnp.float32))
    # cv2
    w2 = 0.1 * jax.random.normal(k6, (cin2, c2), jnp.float32)
    g2 = 1.0 + 0.1 * jax.random.normal(k7, (c2,), jnp.float32)
    b2 = 0.1 * jax.random.normal(k8, (c2,), jnp.float32)
    m2 = jnp.zeros((c2,), jnp.float32)
    v2 = jnp.ones((c2,), jnp.float32)
    s1, bb1 = fold_bn(g1, b1, m1, v1)
    s2, bb2 = fold_bn(g2, b2, m2, v2)
    # Fold BN scale into the weights (one-time parameter fold).
    w1f = w1 * s1[None, :]
    w2f = w2 * s2[None, :]
    w2_chunks = tuple(w2f[i * c_:(i + 1) * c_, :] for i in range(len(ks) + 1))
    return dict(w1=w1f, bias1=bb1, w2_chunks=w2_chunks, bias2=bb2, ks=tuple(ks))


def spp_forward(x_nchw, params):
    # NCHW (PyTorch) -> NHWC (kernel layout)
    x = jnp.transpose(x_nchw, (0, 2, 3, 1)).astype(jnp.float32)
    n, h, w, c1 = x.shape
    m = n * h * w
    tm = _pick_row_tile(m)
    c_ = params["w1"].shape[1]
    # cv1 (1x1 conv + folded BN + SiLU), tiled over rows
    y2d = conv1x1_bn_silu(x.reshape(m, c1), params["w1"], params["bias1"], tm)
    y = y2d.reshape(n, h, w, c_)
    # cascaded SPPF pools: one kernel -> p5, p9, p13
    r = params["ks"][0] // 2
    p5, p9, p13 = sppf_pools(y, r)
    # fused concat + cv2
    c2 = params["w2_chunks"][0].shape[1]
    z2d = cv2_fused(y2d, p5.reshape(m, c_), p9.reshape(m, c_),
                    p13.reshape(m, c_), params["w2_chunks"],
                    params["bias2"], tm)
    z = z2d.reshape(n, h, w, c2)
    return jnp.transpose(z, (0, 3, 1, 2))
    # TODO(synk): for large models, cast activations/weights to bf16 on the
    # MXU path (keep f32 accumulation) on v6e/v7x for extra bandwidth.


# ---------------------------------------------------------------------------
# Pure-JAX reference (same folded params) for a correctness check.
# ---------------------------------------------------------------------------
def spp_reference(x_nchw, params):
    x = jnp.transpose(x_nchw, (0, 2, 3, 1)).astype(jnp.float32)

    def conv(xx, ww, bb):
        y = jnp.einsum("nhwc,cd->nhwd", xx, ww) + bb
        return y * jax.nn.sigmoid(y)

    def maxpool(xx, k):
        rr = k // 2
        return jax.lax.reduce_window(
            xx, -jnp.inf, jax.lax.max, (1, k, k, 1), (1, 1, 1, 1),
            ((0, 0), (rr, rr), (rr, rr), (0, 0)))

    y = conv(x, params["w1"], params["bias1"])
    pools = [maxpool(y, k) for k in params["ks"]]
    cat = jnp.concatenate([y] + pools, axis=-1)
    w2 = jnp.concatenate(params["w2_chunks"], axis=0)
    z = conv(cat, w2, params["bias2"])
    return jnp.transpose(z, (0, 3, 1, 2))


if __name__ == "__main__":
    key = jax.random.PRNGKey(0)
    kx, kp = jax.random.split(key)

    # Small shapes consistent with the module: N=2, c1=4, c2=8, 16x16 spatial.
    N, C1, C2, H, W = 2, 4, 8, 16, 16
    x = jax.random.normal(kx, (N, C1, H, W), jnp.float32)

    params = init_spp_params(kp, C1, C2)

    out = jax.block_until_ready(spp_forward(x, params))
    ref = jax.block_until_ready(spp_reference(x, params))

    assert out.shape == (N, C2, H, W), out.shape
    assert bool(jnp.all(jnp.isfinite(out)))
    assert bool(jnp.allclose(out, ref, atol=1e-2, rtol=1e-2)), \
        float(jnp.max(jnp.abs(out - ref)))
    print("KERNEL_OK")
</pallas_src>

<mosaic_0001>
module attributes {stable_mosaic.version = 11 : i64} {
  func.func @_conv1x1_silu_kernel(%arg0: i32, %arg1: memref<256x4xf32, #tpu.memory_space<vmem>>, %arg2: memref<4x2xf32, #tpu.memory_space<vmem>>, %arg3: memref<1x2xf32, #tpu.memory_space<vmem>>, %arg4: memref<256x2xf32, #tpu.memory_space<vmem>>) attributes {dimension_semantics = [#tpu.dimension_semantics<parallel>], iteration_bounds = array<i64: 2>, scalar_prefetch = 0 : i64, scratch_operands = 0 : i64, tpu.core_type = #tpu.core_type<tc>, window_params = [{transform_indices = @transform_0, window_bounds = array<i64: 256, 4>}, {pipeline_mode = #tpu.pipeline_mode<synchronous>, transform_indices = @transform_1, window_bounds = array<i64: 4, 2>}, {pipeline_mode = #tpu.pipeline_mode<synchronous>, transform_indices = @transform_2, window_bounds = array<i64: 1, 2>}, {transform_indices = @transform_3, window_bounds = array<i64: 256, 2>}]} {
    %c0 = arith.constant 0 : index
    %c0_0 = arith.constant 0 : index
    %0 = vector.load %arg1[%c0, %c0_0] : memref<256x4xf32, #tpu.memory_space<vmem>>, vector<256x4xf32>
    %c0_1 = arith.constant 0 : index
    %c0_2 = arith.constant 0 : index
    %1 = vector.load %arg2[%c0_1, %c0_2] : memref<4x2xf32, #tpu.memory_space<vmem>>, vector<4x2xf32>
    %cst = arith.constant dense<0.000000e+00> : vector<256x2xf32>
    %2 = tpu.matmul %0, %1, %cst {dimension_numbers = #tpu.dot_dimension_numbers<[1], [0], [0], [1], [0, 0, 1, 1], [], []>} : vector<256x4xf32>, vector<4x2xf32>, vector<256x2xf32> -> vector<256x2xf32>
    %c0_3 = arith.constant 0 : index
    %c0_4 = arith.constant 0 : index
    %3 = vector.load %arg3[%c0_3, %c0_4] : memref<1x2xf32, #tpu.memory_space<vmem>>, vector<1x2xf32>
    %4 = vector.broadcast %3 : vector<1x2xf32> to vector<256x2xf32>
    %5 = arith.addf %2, %4 : vector<256x2xf32>
    %6 = arith.negf %5 : vector<256x2xf32>
    %7 = math.exp %6 : vector<256x2xf32>
    %cst_5 = arith.constant 1.000000e+00 : f32
    %8 = vector.broadcast %cst_5 : f32 to vector<256x2xf32>
    %9 = arith.addf %8, %7 : vector<256x2xf32>
    %10 = arith.divf %8, %9 : vector<256x2xf32>
    %11 = arith.mulf %5, %10 : vector<256x2xf32>
    %c0_6 = arith.constant 0 : index
    %c0_7 = arith.constant 0 : index
    %12 = vector.load %arg4[%c0_6, %c0_7] : memref<256x2xf32, #tpu.memory_space<vmem>>, vector<256x2xf32>
    tpu.vector_store %arg4[%c0_6, %c0_7], %11 {strides = array<i32>} : memref<256x2xf32, #tpu.memory_space<vmem>>, vector<256x2xf32>,
    return
  }
  func.func @transform_0(%arg0: i32) -> (i32, i32) {
    %c0_i32 = arith.constant 0 : i32
    %c0_i32_0 = arith.constant 0 : i32
    return %arg0, %c0_i32 : i32, i32
  }
  func.func @transform_1(%arg0: i32) -> (i32, i32) {
    %c0_i32 = arith.constant 0 : i32
    %c0_i32_0 = arith.constant 0 : i32
    %c0_i32_1 = arith.constant 0 : i32
    return %c0_i32, %c0_i32_0 : i32, i32
  }
  func.func @transform_2(%arg0: i32) -> (i32, i32) {
    %c0_i32 = arith.constant 0 : i32
    %c0_i32_0 = arith.constant 0 : i32
    %c0_i32_1 = arith.constant 0 : i32
    return %c0_i32, %c0_i32_0 : i32, i32
  }
  func.func @transform_3(%arg0: i32) -> (i32, i32) {
    %c0_i32 = arith.constant 0 : i32
    %c0_i32_0 = arith.constant 0 : i32
    return %arg0, %c0_i32 : i32, i32
  }
}

</mosaic_0001>

<bundles_post_ra>
// kernel: tpu_custom_call.1
= control target key start
LH: loop header
LB: loop body
LE: loop exit
PB: predicated region body
PF: predicated region fallthrough
CT: control target
= control target key end

     0   :  { %s1179_s12 = smov 0   ;;  %s1524_s0 = inlined_call_operand.vmem [shape: f32[512,4], index: 0, kind: input, shape index: {}]   ;;  %s1525_s1 = inlined_call_operand.vmem [shape: f32[4,2], index: 1, kind: input, shape index: {}]   ;;  %s1526_s2 = inlined_call_operand.vmem [shape: f32[1,2], index: 2, kind: input, shape index: {}]   ;;  %s1527_s3 = inlined_call_operand.vmem [shape: f32[512,2], index: 3, kind: output, shape index: {}]  }
   0x1 LB: > { %s853_s13 = sadd.s32 4294967295, %s1157_s12   ;;  %p857_p0 = scmp.ge.s32.totalorder %s1157_s12, 1  ;;  %s1157_s12 = sphi %s1179_s12, %s13_s12  }
   0x2   : > { %p138_p1 = scmp.lt.s32.totalorder %s1157_s12, 3 }
   0x4   : > { %p139_p2 = pnand %p857_p0, %p138_p1 }
   0x5   : > { %v206_v0 = vld [vmem:[%s1525_s1] sm:$0xf] (!%p139_p2)  ;;  %vm311_vm0 = vcmask (!%p139_p2), 1043456   ;;  %s858_s16 = sshll.u32 (!%p139_p2), %s853_s13, 5  ;;  %vm214_vm1 = vcmask (!%p139_p2), 31744   ;;  %vm764_vm2 = vcmask (!%p139_p2), 15360  }
   0x6   : > { %142 = sbr.rel (%p139_p2) target bundleno = 318 (0x13e), region = 32  ;;  %963 = vmatprep.subr.msk.mxu0 (!%p139_p2), %vm311_vm0, %v206_v0  ;;  %1013 = vmatprep.subr.msk.mxu1 (!%p139_p2), %vm311_vm0, %v206_v0  ;;  %p163_p3 = scmp.lt.s32.totalorder (!%p139_p2), %s858_s16, 63  ;;  %v1267_v33 = vld [vmem:[%s1526_s2] ss:$0 sm:$0xff] (!%p139_p2) }
   0x7   : > { %964 = vmatpush3.msk.msra.mxu0 (!%p139_p2), %vm311_vm0, %v206_v0  ;;  %1014 = vmatpush3.msk.msra.mxu1 (!%p139_p2), %vm311_vm0, %v206_v0 }
   0xd   : > { %s1529_s16 = smov (!%p163_p3, %s858_s16), 63 }
   0xe   : > { %s859_s17 = sshll.u32 %s1529_s16, 3 }
   0xf   : > { %s1198_s20 = scalar_lea.vmem %s1524_s0, %s859_s17  ;;  %s1348_s25 = scalar_lea.vmem %s1527_s3, %s859_s17 }
  0x10   : > { %v174_v1 = vld [vmem:[%s1198_s20] sm:$0xff]  ;;  %v175_v3 = vld [vmem:[%s1198_s20 + $0x8] sm:$0xff]  ;;  %v176_v5 = vld [vmem:[%s1198_s20 + $0x10] sm:$0xff] }
  0x11   : > { %v190_v2 = vld [vmem:[%s1198_s20 + $0x80] sm:$0xff]  ;;  %965 = vmatprep.mubr.msk.f32.mxu0 %vm214_vm1, %v174_v1  ;;  %v191_v4 = vld [vmem:[%s1198_s20 + $0x88] sm:$0xff]  ;;  %v192_v6 = vld [vmem:[%s1198_s20 + $0x90] sm:$0xff] }
  0x12   : > { %989 = vmatprep.mubr.msk.f32.mxu1 %vm214_vm1, %v190_v2  ;;  %966 = vmatmul.mubr.msk.f32.vlgmr.msra.gmra.mrb[0].mxu0 %vm214_vm1, %v175_v3  ;;  %v177_v7 = vld [vmem:[%s1198_s20 + $0x18] sm:$0xff]  ;;  %v178_v9 = vld [vmem:[%s1198_s20 + $0x20] sm:$0xff]  ;;  %v179_v11 = vld [vmem:[%s1198_s20 + $0x28] sm:$0xff] }
  0x13   : > { %990 = vmatmul.mubr.msk.f32.vlgmr.msra.gmra.mrb[0].mxu1 %vm214_vm1, %v191_v4  ;;  %968 = vmatprep.mubr.msk.f32.mxu0 %vm214_vm1, %v176_v5  ;;  %v193_v8 = vld [vmem:[%s1198_s20 + $0x98] sm:$0xff]  ;;  %v194_v10 = vld [vmem:[%s1198_s20 + $0xa0] sm:$0xff]  ;;  %v195_v12 = vld [vmem:[%s1198_s20 + $0xa8] sm:$0xff] }
  0x14   : > { %992 = vmatprep.mubr.msk.f32.mxu1 %vm214_vm1, %v192_v6  ;;  %v180_v13 = vld [vmem:[%s1198_s20 + $0x30] sm:$0xff]  ;;  %v181_v15 = vld [vmem:[%s1198_s20 + $0x38] sm:$0xff]  ;;  %v182_v17 = vld [vmem:[%s1198_s20 + $0x40] sm:$0xff] }
  0x15   : > { %v196_v14 = vld [vmem:[%s1198_s20 + $0xb0] sm:$0xff]  ;;  %v197_v16 = vld [vmem:[%s1198_s20 + $0xb8] sm:$0xff]  ;;  %v198_v18 = vld [vmem:[%s1198_s20 + $0xc0] sm:$0xff] }
  0x16   : > { %969 = vmatmul.mubr.msk.f32.gmra.mrb[2].mxu0 %vm214_vm1, %v177_v7  ;;  %v183_v19 = vld [vmem:[%s1198_s20 + $0x48] sm:$0xff]  ;;  %v184_v21 = vld [vmem:[%s1198_s20 + $0x50] sm:$0xff]  ;;  %v185_v23 = vld [vmem:[%s1198_s20 + $0x58] sm:$0xff] }
  0x17   : > { %993 = vmatmul.mubr.msk.f32.gmra.mrb[2].mxu1 %vm214_vm1, %v193_v8  ;;  %971 = vmatprep.mubr.msk.f32.mxu0 %vm214_vm1, %v178_v9  ;;  %v199_v20 = vld [vmem:[%s1198_s20 + $0xc8] sm:$0xff]  ;;  %v200_v22 = vld [vmem:[%s1198_s20 + $0xd0] sm:$0xff]  ;;  %v201_v24 = vld [vmem:[%s1198_s20 + $0xd8] sm:$0xff] }
  0x18   : > { %995 = vmatprep.mubr.msk.f32.mxu1 %vm214_vm1, %v194_v10  ;;  %v186_v25 = vld [vmem:[%s1198_s20 + $0x60] sm:$0xff]  ;;  %v187_v27 = vld [vmem:[%s1198_s20 + $0x68] sm:$0xff]  ;;  %v188_v29 = vld [vmem:[%s1198_s20 + $0x70] sm:$0xff] }
  0x19   : > { %v202_v26 = vld [vmem:[%s1198_s20 + $0xe0] sm:$0xff]  ;;  %v203_v28 = vld [vmem:[%s1198_s20 + $0xe8] sm:$0xff]  ;;  %v204_v30 = vld [vmem:[%s1198_s20 + $0xf0] sm:$0xff] }
  0x1a   : > { %972 = vmatmul.mubr.msk.f32.gmra.mrb[4].mxu0 %vm214_vm1, %v179_v11  ;;  %v189_v31 = vld [vmem:[%s1198_s20 + $0x78] sm:$0xff] }
  0x1b   : > { %996 = vmatmul.mubr.msk.f32.gmra.mrb[4].mxu1 %vm214_vm1, %v195_v12  ;;  %974 = vmatprep.mubr.msk.f32.mxu0 %vm214_vm1, %v180_v13  ;;  %v205_v32 = vld [vmem:[%s1198_s20 + $0xf8] sm:$0xff] }
  0x1c   : > { %998 = vmatprep.mubr.msk.f32.mxu1 %vm214_vm1, %v196_v14 }
  0x1e   : > { %975 = vmatmul.mubr.msk.f32.gmra.mrb[6].mxu0 %vm214_vm1, %v181_v15 }
  0x1f   : > { %999 = vmatmul.mubr.msk.f32.gmra.mrb[6].mxu1 %vm214_vm1, %v197_v16  ;;  %977 = vmatprep.mubr.msk.f32.mxu0 %vm214_vm1, %v182_v17 }
  0x20   : > { %1001 = vmatprep.mubr.msk.f32.mxu1 %vm214_vm1, %v198_v18 }
  0x22   : > { %978 = vmatmul.mubr.msk.f32.gmra.mrb[8].mxu0 %vm214_vm1, %v183_v19 }
  0x23   : > { %1002 = vmatmul.mubr.msk.f32.gmra.mrb[8].mxu1 %vm214_vm1, %v199_v20  ;;  %980 = vmatprep.mubr.msk.f32.mxu0 %vm214_vm1, %v184_v21 }
  0x24   : > { %1004 = vmatprep.mubr.msk.f32.mxu1 %vm214_vm1, %v200_v22 }
  0x26   : > { %981 = vmatmul.mubr.msk.f32.gmra.mrb[10].mxu0 %vm214_vm1, %v185_v23 }
  0x27   : > { %1005 = vmatmul.mubr.msk.f32.gmra.mrb[10].mxu1 %vm214_vm1, %v201_v24  ;;  %983 = vmatprep.mubr.msk.f32.mxu0 %vm214_vm1, %v186_v25 }
  0x28   : > { %1007 = vmatprep.mubr.msk.f32.mxu1 %vm214_vm1, %v202_v26 }
  0x2a   : > { %984 = vmatmul.mubr.msk.f32.gmra.mrb[12].mxu0 %vm214_vm1, %v187_v27 }
  0x2b   : > { %1008 = vmatmul.mubr.msk.f32.gmra.mrb[12].mxu1 %vm214_vm1, %v203_v28  ;;  %986 = vmatprep.mubr.msk.f32.mxu0 %vm214_vm1, %v188_v29 }
  0x2c   : > { %1010 = vmatprep.mubr.msk.f32.mxu1 %vm214_vm1, %v204_v30 }
  0x2e   : > { %987 = vmatmul.mubr.msk.f32.gmra.mrb[14].mxu0 %vm214_vm1, %v189_v31 }
  0x2f   : > { %1011 = vmatmul.mubr.msk.f32.gmra.mrb[14].mxu1 %vm214_vm1, %v205_v32 }
  0xe5   : > { %v967_v34 = vpop.f32.mrb[0].mxu0 }
  0xe6   : > { %v991_v35 = vpop.f32.mrb[0].mxu1  ;;  %v1270_v36 = vadd.f32 %v967_v34, %v1267_v33  ;;  %v381_v38 = vpop.f32.mrb[1].mxu0 }
  0xe7   : > { %v1273_v37 = vadd.f32 %v991_v35, %v1267_v33  ;;  %v461_v39 = vpop.f32.mrb[1].mxu1  ;;  %v1276_v40 = vadd.f32 %v1267_v33, %v381_v38 }
  0xe8   : > { %v1279_v41 = vadd.f32 %v1267_v33, %v461_v39  ;;  %v897_v42 = vmul.f32 -1.442695, %v1270_v36 }
  0xe9   : > { %v913_v43 = vmul.f32 -1.442695, %v1273_v37  ;;  %v896_v44 = vmul.f32 -1.442695, %v1276_v40  ;;  %v970_v46 = vpop.f32.mrb[2].mxu0 }
  0xea   : > { %v912_v45 = vmul.f32 -1.442695, %v1279_v41  ;;  %v994_v47 = vpop.f32.mrb[2].mxu1  ;;  %1023 = vpow2.f32 %v897_v42  ;;  %v1286_v48 = vadd.f32 %v970_v46, %v1267_v33  ;;  %v391_v50 = vpop.f32.mrb[3].mxu0 }
  0xeb   : > { %v1289_v49 = vadd.f32 %v994_v47, %v1267_v33  ;;  %v471_v51 = vpop.f32.mrb[3].mxu1  ;;  %1025 = vpow2.f32 %v913_v43  ;;  %v1292_v52 = vadd.f32 %v1267_v33, %v391_v50 }
  0xec   : > { %v1295_v53 = vadd.f32 %v1267_v33, %v471_v51  ;;  %1027 = vpow2.f32 %v896_v44  ;;  %v899_v54 = vmul.f32 -1.442695, %v1286_v48 }
  0xed   : > { %v915_v55 = vmul.f32 -1.442695, %v1289_v49  ;;  %1029 = vpow2.f32 %v912_v45  ;;  %v898_v56 = vmul.f32 -1.442695, %v1292_v52  ;;  %v973_v58 = vpop.f32.mrb[4].mxu0 }
  0xee   : > { %v914_v57 = vmul.f32 -1.442695, %v1295_v53  ;;  %v997_v59 = vpop.f32.mrb[4].mxu1  ;;  %1031 = vpow2.f32 %v899_v54  ;;  %v1302_v60 = vadd.f32 %v973_v58, %v1267_v33  ;;  %v401_v62 = vpop.f32.mrb[5].mxu0 }
  0xef   : > { %v1305_v61 = vadd.f32 %v997_v59, %v1267_v33  ;;  %v481_v63 = vpop.f32.mrb[5].mxu1  ;;  %1033 = vpow2.f32 %v915_v55  ;;  %v1308_v0 = vadd.f32 %v1267_v33, %v401_v62 }
  0xf0   : > { %v1311_v1 = vadd.f32 %v1267_v33, %v481_v63  ;;  %1035 = vpow2.f32 %v898_v56  ;;  %v901_v2 = vmul.f32 -1.442695, %v1302_v60 }
  0xf1   : > { %v917_v3 = vmul.f32 -1.442695, %v1305_v61  ;;  %1037 = vpow2.f32 %v914_v57  ;;  %v900_v4 = vmul.f32 -1.442695, %v1308_v0  ;;  %v976_v6 = vpop.f32.mrb[6].mxu0 }
  0xf2   : > { %v916_v5 = vmul.f32 -1.442695, %v1311_v1  ;;  %v1000_v7 = vpop.f32.mrb[6].mxu1  ;;  %1039 = vpow2.f32 %v901_v2  ;;  %v1318_v8 = vadd.f32 %v976_v6, %v1267_v33  ;;  %v411_v9 = vpop.f32.mrb[7].mxu0 }
  0xf3   : > { %v491_v10 = vpop.f32.mrb[7].mxu1  ;;  %1041 = vpow2.f32 %v917_v3  ;;  %v1324_v42 = vadd.f32 %v1000_v7, %v1267_v33  ;;  %v1327_v45 = vadd.f32 %v1267_v33, %v411_v9 }
  0xf4   : > { %v1024_v11 = vpop.eup %1023  ;;  %1043 = vpow2.f32 %v900_v4  ;;  %v903_v12 = vmul.f32 -1.442695, %v1318_v8  ;;  %v1330_v51 = vadd.f32 %v1267_v33, %v491_v10 }
  0xf5   : > { %v1026_v13 = vpop.eup %1025  ;;  %v637_v14 = vadd.f32 1.0, %v1024_v11  ;;  %1045 = vpow2.f32 %v916_v5  ;;  %v979_v15 = vpop.f32.mrb[8].mxu0  ;;  %v919_v2 = vmul.f32 -1.442695, %v1324_v42  ;;  %v902_v6 = vmul.f32 -1.442695, %v1327_v45 }
  0xf6   : > { %v1028_v16 = vpop.eup %1027  ;;  %v653_v17 = vadd.f32 1.0, %v1026_v13  ;;  %1047 = vpow2.f32 %v903_v12  ;;  %v1003_v18 = vpop.f32.mrb[8].mxu1  ;;  %v1335_v58 = vadd.f32 %v979_v15, %v1267_v33  ;;  %v918_v12 = vmul.f32 -1.442695, %v1330_v51 }
  0xf7   : > { %v421_v19 = vpop.f32.mrb[9].mxu0  ;;  %v1030_v20 = vpop.eup %1029  ;;  %1049 = vrcp.f32 %v637_v14  ;;  %v636_v21 = vadd.f32 1.0, %v1028_v16  ;;  %v1341_v3 = vadd.f32 %v1003_v18, %v1267_v33 }
  0xf8   : > { %v501_v22 = vpop.f32.mrb[9].mxu1  ;;  %v1032_v23 = vpop.eup %1031  ;;  %1051 = vrcp.f32 %v653_v17  ;;  %v652_v24 = vadd.f32 1.0, %v1030_v20  ;;  %v1352_v7 = vadd.f32 %v1267_v33, %v421_v19  ;;  %v905_v18 = vmul.f32 -1.442695, %v1335_v58 }
  0xf9   : > { %v1034_v25 = vpop.eup %1033  ;;  %1053 = vrcp.f32 %v636_v21  ;;  %v639_v26 = vadd.f32 1.0, %v1032_v23  ;;  %v982_v27 = vpop.f32.mrb[10].mxu0  ;;  %v1359_v13 = vadd.f32 %v1267_v33, %v501_v22  ;;  %v921_v22 = vmul.f32 -1.442695, %v1341_v3 }
  0xfa   : > { %v1036_v28 = vpop.eup %1035  ;;  %1055 = vrcp.f32 %v652_v24  ;;  %v655_v29 = vadd.f32 1.0, %v1034_v25  ;;  %v1006_v30 = vpop.f32.mrb[10].mxu1  ;;  %v904_v25 = vmul.f32 -1.442695, %v1352_v7 }
  0xfb   : > { %v431_v31 = vpop.f32.mrb[11].mxu0  ;;  %v1038_v32 = vpop.eup %1037  ;;  %1057 = vrcp.f32 %v639_v26  ;;  %v638_v34 = vadd.f32 1.0, %v1036_v28  ;;  %v920_v28 = vmul.f32 -1.442695, %v1359_v13 }
  0xfc   : > { %v1321_v35 = vpop.f32.mrb[11].mxu1  ;;  %v1040_v38 = vpop.eup %1039  ;;  %1059 = vrcp.f32 %v655_v29  ;;  %v654_v39 = vadd.f32 1.0, %v1038_v32  ;;  %v1384_v26 = vadd.f32 %v1267_v33, %v431_v31 }
  0xfd   : > { %v1042_v43 = vpop.eup %1041  ;;  %1061 = vrcp.f32 %v638_v34  ;;  %v641_v44 = vadd.f32 1.0, %v1040_v38  ;;  %v985_v46 = vpop.f32.mrb[12].mxu0  ;;  %v1392_v29 = vadd.f32 %v1267_v33, %v1321_v35 }
  0xfe   : > { %v1044_v47 = vpop.eup %1043  ;;  %1063 = vrcp.f32 %v654_v39  ;;  %v657_v50 = vadd.f32 1.0, %v1042_v43  ;;  %v1009_v54 = vpop.f32.mrb[12].mxu1  ;;  %v1399_v32 = vadd.f32 %v985_v46, %v1267_v33  ;;  %v906_v43 = vmul.f32 -1.442695, %v1384_v26 }
  0xff   : > { %v1332_v55 = vpop.f32.mrb[13].mxu0  ;;  %v1046_v56 = vpop.eup %1045  ;;  %1065 = vrcp.f32 %v641_v44  ;;  %v640_v57 = vadd.f32 1.0, %v1044_v47  ;;  %v1406_v38 = vadd.f32 %v1009_v54, %v1267_v33  ;;  %v922_v46 = vmul.f32 -1.442695, %v1392_v29 }
 0x100   : > { %v1337_v59 = vpop.f32.mrb[13].mxu1  ;;  %v1048_v62 = vpop.eup %1047  ;;  %1067 = vrcp.f32 %v657_v50  ;;  %v656_v63 = vadd.f32 1.0, %v1046_v56 }
 0x101   : > { %v1050_v4 = vpop.eup %1049  ;;  %1069 = vrcp.f32 %v640_v57  ;;  %v643_v5 = vadd.f32 1.0, %v1048_v62  ;;  %v1354_v9 = vpop.f32.mrb[14].mxu0 }
 0x102   : > { %v1052_v10 = vpop.eup %1051  ;;  %v733_v11 = vmul.f32 %v1050_v4, %v1270_v36  ;;  %1071 = vrcp.f32 %v656_v63  ;;  %v1361_v14 = vpop.f32.mrb[14].mxu1  ;;  %v1368_v36 = vadd.f32 %v982_v27, %v1267_v33 }
 0x103   : > { %v1363_v15 = vpop.f32.mrb[15].mxu0  ;;  %v1054_v16 = vpop.eup %1053  ;;  %v749_v17 = vmul.f32 %v1052_v10, %v1273_v37  ;;  %1073 = vrcp.f32 %v643_v5  ;;  %v1377_v37 = vadd.f32 %v1006_v30, %v1267_v33 }
 0x104   : > { %v1370_v19 = vpop.f32.mrb[15].mxu1  ;;  %v1056_v20 = vpop.eup %1055  ;;  %766 = vst.msk [vmem:[%s1348_s25 + $0x8] sm:$0xff] %vm764_vm2, %v733_v11  ;;  %v732_v21 = vmul.f32 %v1054_v16, %v1276_v40  ;;  %1075 = vpow2.f32 %v919_v2  ;;  %v907_v31 = vmul.f32 -1.442695, %v1368_v36 }
 0x105   : > { %v1058_v23 = vpop.eup %1057  ;;  %782 = vst.msk [vmem:[%s1348_s25 + $0x88] sm:$0xff] %vm764_vm2, %v749_v17  ;;  %v748_v24 = vmul.f32 %v1056_v20, %v1279_v41  ;;  %1077 = vpow2.f32 %v902_v6  ;;  %v923_v35 = vmul.f32 -1.442695, %v1377_v37 }
 0x106   : > { %v1060_v40 = vpop.eup %1059  ;;  %765 = vst.msk [vmem:[%s1348_s25] sm:$0xff] %vm764_vm2, %v732_v21  ;;  %v735_v27 = vmul.f32 %v1058_v23, %v1286_v48  ;;  %1079 = vpow2.f32 %v918_v12  ;;  %v1436_v23 = vadd.f32 %v1267_v33, %v1332_v55  ;;  %v1448_v55 = vadd.f32 %v1361_v14, %v1267_v33 }
 0x107   : > { %v1062_v41 = vpop.eup %1061  ;;  %781 = vst.msk [vmem:[%s1348_s25 + $0x80] sm:$0xff] %vm764_vm2, %v748_v24  ;;  %v751_v30 = vmul.f32 %v1060_v40, %v1289_v49  ;;  %1081 = vpow2.f32 %v905_v18  ;;  %v1440_v40 = vadd.f32 %v1267_v33, %v1337_v59  ;;  %v1458_v14 = vadd.f32 %v1267_v33, %v1370_v19 }
 0x108   : > { %v1064_v48 = vpop.eup %1063  ;;  %768 = vst.msk [vmem:[%s1348_s25 + $0x18] sm:$0xff] %vm764_vm2, %v735_v27  ;;  %v734_v34 = vmul.f32 %v1062_v41, %v1292_v52  ;;  %1083 = vpow2.f32 %v921_v22  ;;  %v1444_v41 = vadd.f32 %v1354_v9, %v1267_v33  ;;  %v908_v59 = vmul.f32 -1.442695, %v1436_v23 }
 0x109   : > { %v1066_v49 = vpop.eup %1065  ;;  %784 = vst.msk [vmem:[%s1348_s25 + $0x98] sm:$0xff] %vm764_vm2, %v751_v30  ;;  %v750_v39 = vmul.f32 %v1064_v48, %v1295_v53  ;;  %1085 = vpow2.f32 %v904_v25  ;;  %v909_v53 = vmul.f32 -1.442695, %v1399_v32 }
 0x10a   : > { %v1068_v44 = vpop.eup %1067  ;;  %767 = vst.msk [vmem:[%s1348_s25 + $0x10] sm:$0xff] %vm764_vm2, %v734_v34  ;;  %v737_v52 = vmul.f32 %v1066_v49, %v1302_v60  ;;  %1087 = vpow2.f32 %v920_v28  ;;  %v925_v60 = vmul.f32 -1.442695, %v1406_v38 }
 0x10b   : > { %v1070_v47 = vpop.eup %1069  ;;  %783 = vst.msk [vmem:[%s1348_s25 + $0x90] sm:$0xff] %vm764_vm2, %v750_v39  ;;  %v753_v50 = vmul.f32 %v1068_v44, %v1305_v61  ;;  %1089 = vpow2.f32 %v907_v31  ;;  %v924_v39 = vmul.f32 -1.442695, %v1440_v40 }
 0x10c   : > { %v1072_v54 = vpop.eup %1071  ;;  %770 = vst.msk [vmem:[%s1348_s25 + $0x28] sm:$0xff] %vm764_vm2, %v737_v52  ;;  %v736_v56 = vmul.f32 %v1070_v47, %v1308_v0  ;;  %1091 = vpow2.f32 %v923_v35  ;;  %v1453_v35 = vadd.f32 %v1267_v33, %v1363_v15  ;;  %v911_v52 = vmul.f32 -1.442695, %v1444_v41 }
 0x10d   : > { %v1074_v57 = vpop.eup %1073  ;;  %786 = vst.msk [vmem:[%s1348_s25 + $0xa8] sm:$0xff] %vm764_vm2, %v753_v50  ;;  %v752_v62 = vmul.f32 %v1072_v54, %v1311_v1  ;;  %1093 = vpow2.f32 %v906_v43  ;;  %v927_v47 = vmul.f32 -1.442695, %v1448_v55 }
 0x10e   : > { %v1076_v61 = vpop.eup %1075  ;;  %769 = vst.msk [vmem:[%s1348_s25 + $0x20] sm:$0xff] %vm764_vm2, %v736_v56  ;;  %v739_v63 = vmul.f32 %v1074_v57, %v1318_v8  ;;  %1095 = vpow2.f32 %v922_v46 }
 0x10f   : > { %v1078_v2 = vpop.eup %1077  ;;  %785 = vst.msk [vmem:[%s1348_s25 + $0xa0] sm:$0xff] %vm764_vm2, %v752_v62  ;;  %v659_v0 = vadd.f32 1.0, %v1076_v61  ;;  %1097 = vpow2.f32 %v909_v53 }
 0x110   : > { %v1080_v4 = vpop.eup %1079  ;;  %772 = vst.msk [vmem:[%s1348_s25 + $0x38] sm:$0xff] %vm764_vm2, %v739_v63  ;;  %v642_v5 = vadd.f32 1.0, %v1078_v2  ;;  %1099 = vpow2.f32 %v925_v60 }
 0x111   : > { %v1082_v6 = vpop.eup %1081  ;;  %1101 = vrcp.f32 %v659_v0  ;;  %v658_v1 = vadd.f32 1.0, %v1080_v4 }
 0x112   : > { %v1084_v10 = vpop.eup %1083  ;;  %1103 = vrcp.f32 %v642_v5  ;;  %v645_v11 = vadd.f32 1.0, %v1082_v6 }
 0x113   : > { %v1086_v12 = vpop.eup %1085  ;;  %1105 = vrcp.f32 %v658_v1  ;;  %v661_v8 = vadd.f32 1.0, %v1084_v10 }
 0x114   : > { %v1088_v16 = vpop.eup %1087  ;;  %1107 = vrcp.f32 %v645_v11  ;;  %v644_v17 = vadd.f32 1.0, %v1086_v12 }
 0x115   : > { %v1090_v18 = vpop.eup %1089  ;;  %1109 = vrcp.f32 %v661_v8  ;;  %v660_v20 = vadd.f32 1.0, %v1088_v16 }
 0x116   : > { %v1092_v21 = vpop.eup %1091  ;;  %1111 = vrcp.f32 %v644_v17  ;;  %v647_v22 = vadd.f32 1.0, %v1090_v18 }
 0x117   : > { %v1094_v24 = vpop.eup %1093  ;;  %1113 = vrcp.f32 %v660_v20  ;;  %v663_v25 = vadd.f32 1.0, %v1092_v21 }
 0x118   : > { %v1096_v27 = vpop.eup %1095  ;;  %1115 = vrcp.f32 %v647_v22  ;;  %v646_v28 = vadd.f32 1.0, %v1094_v24 }
 0x119   : > { %v1098_v30 = vpop.eup %1097  ;;  %1117 = vrcp.f32 %v663_v25  ;;  %v662_v31 = vadd.f32 1.0, %v1096_v27 }
 0x11a   : > { %v1100_v48 = vpop.eup %1099  ;;  %1119 = vrcp.f32 %v646_v28  ;;  %v649_v34 = vadd.f32 1.0, %v1098_v30 }
 0x11b   : > { %v1102_v49 = vpop.eup %1101  ;;  %1121 = vrcp.f32 %v662_v31  ;;  %v665_v9 = vadd.f32 1.0, %v1100_v48 }
 0x11c   : > { %v1104_v43 = vpop.eup %1103  ;;  %v755_v44 = vmul.f32 %v1102_v49, %v1324_v42  ;;  %1123 = vrcp.f32 %v649_v34  ;;  %v910_v42 = vmul.f32 -1.442695, %v1453_v35 }
 0x11d   : > { %v1106_v46 = vpop.eup %1105  ;;  %v738_v15 = vmul.f32 %v1104_v43, %v1327_v45  ;;  %1125 = vrcp.f32 %v665_v9  ;;  %v926_v45 = vmul.f32 -1.442695, %v1458_v14 }
 0x11e   : > { %v1108_v50 = vpop.eup %1107  ;;  %788 = vst.msk [vmem:[%s1348_s25 + $0xb8] sm:$0xff] %vm764_vm2, %v755_v44  ;;  %v754_v33 = vmul.f32 %v1106_v46, %v1330_v51  ;;  %1127 = vpow2.f32 %v908_v59 }
 0x11f   : > { %v1110_v19 = vpop.eup %1109  ;;  %771 = vst.msk [vmem:[%s1348_s25 + $0x30] sm:$0xff] %vm764_vm2, %v738_v15  ;;  %v741_v53 = vmul.f32 %v1108_v50, %v1335_v58  ;;  %1129 = vpow2.f32 %v924_v39 }
 0x120   : > { %v1112_v54 = vpop.eup %1111  ;;  %787 = vst.msk [vmem:[%s1348_s25 + $0xb0] sm:$0xff] %vm764_vm2, %v754_v33  ;;  %v757_v56 = vmul.f32 %v1110_v19, %v1341_v3  ;;  %1131 = vpow2.f32 %v911_v52 }
 0x121   : > { %v1114_v51 = vpop.eup %1113  ;;  %774 = vst.msk [vmem:[%s1348_s25 + $0x48] sm:$0xff] %vm764_vm2, %v741_v53  ;;  %v740_v60 = vmul.f32 %v1112_v54, %v1352_v7  ;;  %1133 = vpow2.f32 %v927_v47 }
 0x122   : > { %v1116_v58 = vpop.eup %1115  ;;  %790 = vst.msk [vmem:[%s1348_s25 + $0xc8] sm:$0xff] %vm764_vm2, %v757_v56  ;;  %v756_v57 = vmul.f32 %v1114_v51, %v1359_v13  ;;  %1135 = vpow2.f32 %v910_v42 }
 0x123   : > { %v1118_v62 = vpop.eup %1117  ;;  %773 = vst.msk [vmem:[%s1348_s25 + $0x40] sm:$0xff] %vm764_vm2, %v740_v60  ;;  %v743_v3 = vmul.f32 %v1116_v58, %v1368_v36  ;;  %1137 = vpow2.f32 %v926_v45 }
 0x124   : > { %v1120_v61 = vpop.eup %1119  ;;  %789 = vst.msk [vmem:[%s1348_s25 + $0xc0] sm:$0xff] %vm764_vm2, %v756_v57  ;;  %v759_v7 = vmul.f32 %v1118_v62, %v1377_v37 }
 0x125   : > { %v1122_v63 = vpop.eup %1121  ;;  %776 = vst.msk [vmem:[%s1348_s25 + $0x58] sm:$0xff] %vm764_vm2, %v743_v3  ;;  %v742_v13 = vmul.f32 %v1120_v61, %v1384_v26 }
 0x126   : > { %v1124_v2 = vpop.eup %1123  ;;  %792 = vst.msk [vmem:[%s1348_s25 + $0xd8] sm:$0xff] %vm764_vm2, %v759_v7  ;;  %v758_v0 = vmul.f32 %v1122_v63, %v1392_v29 }
 0x127   : > { %v1126_v4 = vpop.eup %1125  ;;  %775 = vst.msk [vmem:[%s1348_s25 + $0x50] sm:$0xff] %vm764_vm2, %v742_v13  ;;  %v745_v36 = vmul.f32 %v1124_v2, %v1399_v32 }
 0x128   : > { %v1128_v5 = vpop.eup %1127  ;;  %791 = vst.msk [vmem:[%s1348_s25 + $0xd0] sm:$0xff] %vm764_vm2, %v758_v0  ;;  %v761_v37 = vmul.f32 %v1126_v4, %v1406_v38 }
 0x129   : > { %v1130_v6 = vpop.eup %1129  ;;  %778 = vst.msk [vmem:[%s1348_s25 + $0x68] sm:$0xff] %vm764_vm2, %v745_v36  ;;  %v648_v1 = vadd.f32 1.0, %v1128_v5 }
 0x12a   : > { %v1132_v26 = vpop.eup %1131  ;;  %794 = vst.msk [vmem:[%s1348_s25 + $0xe8] sm:$0xff] %vm764_vm2, %v761_v37  ;;  %v664_v10 = vadd.f32 1.0, %v1130_v6 }
 0x12b   : > { %v1134_v11 = vpop.eup %1133  ;;  %1139 = vrcp.f32 %v648_v1  ;;  %v651_v29 = vadd.f32 1.0, %v1132_v26 }
 0x12c   : > { %v1136_v12 = vpop.eup %1135  ;;  %1141 = vrcp.f32 %v664_v10  ;;  %v667_v32 = vadd.f32 1.0, %v1134_v11 }
 0x12d   : > { %v1138_v8 = vpop.eup %1137  ;;  %1143 = vrcp.f32 %v651_v29  ;;  %v650_v16 = vadd.f32 1.0, %v1136_v12 }
 0x12e   : > { %1145 = vrcp.f32 %v667_v32  ;;  %v666_v38 = vadd.f32 1.0, %v1138_v8 }
 0x12f   : > { %1147 = vrcp.f32 %v650_v16 }
 0x130   : > { %1149 = vrcp.f32 %v666_v38 }
 0x135   : > { %v1140_v17 = vpop.eup %1139 }
 0x136   : > { %v1142_v18 = vpop.eup %1141  ;;  %v744_v20 = vmul.f32 %v1140_v17, %v1436_v23 }
 0x137   : > { %v1144_v21 = vpop.eup %1143  ;;  %v760_v22 = vmul.f32 %v1142_v18, %v1440_v40 }
 0x138   : > { %v1146_v24 = vpop.eup %1145  ;;  %777 = vst.msk [vmem:[%s1348_s25 + $0x60] sm:$0xff] %vm764_vm2, %v744_v20  ;;  %v747_v25 = vmul.f32 %v1144_v21, %v1444_v41 }
 0x139   : > { %v1148_v27 = vpop.eup %1147  ;;  %793 = vst.msk [vmem:[%s1348_s25 + $0xe0] sm:$0xff] %vm764_vm2, %v760_v22  ;;  %v763_v28 = vmul.f32 %v1146_v24, %v1448_v55 }
 0x13a   : > { %v1150_v30 = vpop.eup %1149  ;;  %780 = vst.msk [vmem:[%s1348_s25 + $0x78] sm:$0xff] %vm764_vm2, %v747_v25  ;;  %v746_v31 = vmul.f32 %v1148_v27, %v1453_v35 }
 0x13b   : > { %796 = vst.msk [vmem:[%s1348_s25 + $0xf8] sm:$0xff] %vm764_vm2, %v763_v28  ;;  %v762_v23 = vmul.f32 %v1150_v30, %v1458_v14 }
 0x13c   : > { %779 = vst.msk [vmem:[%s1348_s25 + $0x70] sm:$0xff] %vm764_vm2, %v746_v31 }
 0x13d   : > { %795 = vst.msk [vmem:[%s1348_s25 + $0xf0] sm:$0xff] %vm764_vm2, %v762_v23 }
 0x13e PF: > { %s13_s12 = sadd.s32 1, %s1157_s12  }
 0x13f   : > { %p10_p4 = scmp.ge.s32.totalorder %s13_s12, 4  }
 0x141   :  { %12 = sbr.rel (!%p10_p4) target bundleno = 1 (0x1), region = 62 }

</bundles_post_ra>
